<compile_context>
chip_gen: v7x
topology: tpu7x:2x2x1
jax: 0.10.0
libtpu: 0.0.40
codegen_flags: <defaults>
</compile_context>

<pallas_src>
import jax
import jax.numpy as jnp
from jax.experimental import pallas as pl
from jax.experimental.pallas import tpu as pltpu


def _dma_copy_kernel(x_hbm_ref, o_hbm_ref, copy_sem):
    # Whole "noiseless channel" forward pass: y -> y, as one DMA-engine
    # HBM -> HBM copy.  No VMEM staging, no vector loads/stores.
    copy = pltpu.make_async_copy(x_hbm_ref, o_hbm_ref, copy_sem)
    copy.start()
    copy.wait()


def _pallas_identity_copy(y: jax.Array) -> jax.Array:
    """Bit-exact copy of `y` into a fresh buffer via a single HBM->HBM DMA."""
    nbytes = int(y.size) * jnp.dtype(y.dtype).itemsize
    return pl.pallas_call(
        _dma_copy_kernel,
        out_shape=jax.ShapeDtypeStruct(y.shape, y.dtype),
        in_specs=[pl.BlockSpec(memory_space=pl.ANY)],   # raw HBM ref, no auto-DMA
        out_specs=pl.BlockSpec(memory_space=pl.ANY),    # raw HBM ref, no auto-DMA
        scratch_shapes=[pltpu.SemaphoreType.DMA],
        cost_estimate=pl.CostEstimate(
            flops=0, transcendentals=0, bytes_accessed=2 * nbytes),
    )(y)


def noiseless_forward(y: jax.Array, *, materialize: bool = False) -> jax.Array:
    """Pallas implementation of Noiseless.forward (identity).

    Default (materialize=False): return `y` unchanged — matches the PyTorch
    module, which simply returns its input; no HBM traffic, no kernel launch.

    materialize=True: produce a freshly-allocated, bit-identical buffer using
    a direct HBM->HBM DMA Pallas kernel (useful when a distinct output buffer
    is required, and to exercise the kernel).
    """
    if not materialize:
        return y
    if y.ndim == 0 or y.size == 0:
        return y  # nothing worth a DMA; identity is already exact
    return _pallas_identity_copy(y)


if __name__ == "__main__":
    key = jax.random.PRNGKey(0)

    # Primary case, consistent with the module's intended NCHW use.
    y = jax.random.normal(key, (2, 4, 16, 16), dtype=jnp.float32)

    # Default path: true identity (no copy, no kernel) — the module semantics.
    out_id = jax.block_until_ready(noiseless_forward(y))
    assert out_id.shape == y.shape and out_id.dtype == y.dtype
    assert bool(jnp.all(out_id == y))

    # Materialized path: exercise the Pallas HBM->HBM DMA copy kernel.
    out = jax.block_until_ready(noiseless_forward(y, materialize=True))
    assert out.shape == y.shape and out.dtype == y.dtype
    assert bool(jnp.all(out == y))

    # Non-128 trailing dim.
    y2 = jax.random.normal(jax.random.PRNGKey(0), (20, 1000), dtype=jnp.float32)
    out2 = jax.block_until_ready(noiseless_forward(y2, materialize=True))
    assert out2.shape == y2.shape and bool(jnp.all(out2 == y2))

    # bf16, tiny odd shape (no lane-masking concerns: DMA copies bytes).
    y3 = jax.random.normal(jax.random.PRNGKey(0), (3, 5, 7)).astype(jnp.bfloat16)
    out3 = jax.block_until_ready(noiseless_forward(y3, materialize=True))
    assert out3.shape == y3.shape and out3.dtype == y3.dtype
    assert bool(jnp.all(out3 == y3))

    print("KERNEL_OK")
</pallas_src>

<mosaic_0001>
module attributes {stable_mosaic.version = 11 : i64} {
  func.func @_dma_copy_kernel(%arg0: memref<2x4x16x16xf32, #tpu.memory_space<any>>, %arg1: memref<2x4x16x16xf32, #tpu.memory_space<any>>, %arg2: memref<!tpu.dma_semaphore, #tpu.memory_space<semaphore_mem>>) attributes {dimension_semantics = [], scalar_prefetch = 0 : i64, scratch_operands = 1 : i64, tpu.core_type = #tpu.core_type<tc>} {
    tpu.enqueue_dma source(%arg0 : memref<2x4x16x16xf32, #tpu.memory_space<any>>) target(%arg1 : memref<2x4x16x16xf32, #tpu.memory_space<any>>) target_semaphore(%arg2 : memref<!tpu.dma_semaphore, #tpu.memory_space<semaphore_mem>>)
    tpu.wait_dma2 semaphore(%arg2 : memref<!tpu.dma_semaphore, #tpu.memory_space<semaphore_mem>>) src(%arg0 : memref<2x4x16x16xf32, #tpu.memory_space<any>>) dst(%arg1 : memref<2x4x16x16xf32, #tpu.memory_space<any>>)
    return
  }
}

</mosaic_0001>

<bundles_post_ra>
// kernel: tpu_custom_call.1
= control target key start
LH: loop header
LB: loop body
LE: loop exit
PB: predicated region body
PF: predicated region fallthrough
CT: control target
= control target key end

     0   :  { %s36_s6 = smov [#allocation2]   ;;  %s37_s7 = smov [#allocation3]   ;;  %s55_s0 = inlined_call_operand.hbm [shape: f32[2,4,16,16], index: 0, kind: input, shape index: {}]   ;;  %s56_s1 = inlined_call_operand.hbm [shape: f32[2,4,16,16], index: 1, kind: output, shape index: {}]  }
   0x1   :  { %s38_s8 = smov 0  }
   0x2   :  { %18 = dma.general %s55_s0, 2048, %s56_s1, %s36_s6, %s37_s7, [#allocation4], %s38_s8, 0  }
   0x3   :  { %34 = dma.done.wait [#allocation2], 2048 }
   0x4   :  { %35 = vsyncadd [#allocation2], 4294965248 }
   0x5   :  { %24 = vsyncmov [#allocation2] }
   0x8   :  { %s25_s13 = vpop.sfrf %24 }
   0x9   :  { %p30_p0 = scmp.ne.s32.totalorder %s25_s13, 0 }
   0xb   :  { %29 = shalt.err (%p30_p0)  }

</bundles_post_ra>
